<compile_context>
chip_gen: v5e
topology: v5e:2x2
jax: 0.10.0
libtpu: 0.0.40
codegen_flags: <defaults>
</compile_context>

<pallas_src>
import numpy as np
import jax
import jax.numpy as jnp
from jax.experimental import pallas as pl
from jax.experimental.pallas import tpu as pltpu


# ---------- positional encoding (identical math to the PyTorch reference) ----------
def get_angles(pos, i, d_model):
    angle_rates = 1.0 / np.power(10000, 2 * (i // 2) / np.float32(d_model))
    return pos * angle_rates


def positional_encoding(position, d_model):
    angle_rads = get_angles(
        np.arange(position)[:, np.newaxis],
        np.arange(d_model)[np.newaxis, :],
        d_model,
    )
    angle_rads[:, 0::2] = np.sin(angle_rads[:, 0::2])
    angle_rads[:, 1::2] = np.cos(angle_rads[:, 1::2])
    return jnp.asarray(angle_rads, dtype=jnp.float32)  # (position, d_model)


# ---------------------------- Pallas kernel ----------------------------
def _embed_add_kernel(ids_ref, emb_ref, pos_ref, o_ref):
    # ids_ref : (S*B,) int32 in SMEM (scalar prefetch), flat row index = s*B + b
    # emb_ref : (V, D)  f32 VMEM-resident embedding table (same block every step)
    # pos_ref : (TS, D) f32 positional-encoding tile for this S-tile
    # o_ref   : (TS*B, D) f32 output tile (flat rows s*B + b)
    rows = o_ref.shape[0]          # TS * B   (compile-time constant)
    ts = pos_ref.shape[0]          # TS
    b = rows // ts                 # B
    v = emb_ref.shape[0]           # vocab size
    base = pl.program_id(0) * rows  # flat row offset of this tile

    # Small static unroll: `rows` is a compile-time constant kept modest by the
    # wrapper's tile chooser.  Only the token id is a dynamic index; row/pos
    # offsets are static.
    for r in range(rows):
        tok = ids_ref[base + r]
        tok = jnp.clip(tok, 0, v - 1)          # guard against OOB token ids
        s_local = r // b                       # static python int
        o_ref[pl.ds(r, 1), :] = (
            emb_ref[pl.ds(tok, 1), :] + pos_ref[s_local:s_local + 1, :]
        )


def text_input_forward(src, embed_table, pos_enc, *, rows_per_tile_target=512):
    """src: (B, S) int ids; embed_table: (V, D) f32; pos_enc: (S, D) f32 -> (S, B, D) f32."""
    B, S = src.shape
    V, D = embed_table.shape

    # Flat ids with layout row = s*B + b (matches output (S, B, D) flattened to (S*B, D)).
    ids = jnp.transpose(src).reshape(S * B).astype(jnp.int32)

    # Choose an S-tile TS: a multiple of 8 that divides S (or the full S), sized so
    # TS*B rows amortize per-step overhead without blowing VMEM.
    if S % 8 == 0:
        ts = 8
        while ts * 2 <= S and S % (ts * 2) == 0 and (ts * 2) * B <= rows_per_tile_target:
            ts *= 2
    else:
        ts = S  # full-extent block is always legal
    n_tiles = S // ts
    rows = ts * B

    out_flat = pl.pallas_call(
        _embed_add_kernel,
        out_shape=jax.ShapeDtypeStruct((S * B, D), jnp.float32),
        grid_spec=pltpu.PrefetchScalarGridSpec(
            num_scalar_prefetch=1,                     # flat ids -> SMEM
            grid=(n_tiles,),
            in_specs=[
                # Embedding table: whole array, same block every step -> VMEM-resident.
                pl.BlockSpec((V, D), lambda i, ids_ref: (0, 0)),
                # Positional encoding: one (TS, D) tile per S-tile.
                pl.BlockSpec((ts, D), lambda i, ids_ref: (i, 0)),
            ],
            out_specs=pl.BlockSpec((rows, D), lambda i, ids_ref: (i, 0)),
        ),
        compiler_params=pltpu.CompilerParams(
            dimension_semantics=("parallel",),          # unique output block per step
            vmem_limit_bytes=32 * 1024 * 1024,
        ),
    )(ids, embed_table, pos_enc)

    return out_flat.reshape(S, B, D)


# ------------------------------- demo / check -------------------------------
if __name__ == "__main__":
    key = jax.random.PRNGKey(0)
    B, S = 2, 8            # batch, sequence length
    V, D = 50, 256         # in_dim (vocab), out_dim (= d_model in the spec)

    k_emb, k_src = jax.random.split(key)
    # nn.Embedding default init: N(0, 1)
    embed_table = jax.random.normal(k_emb, (V, D), dtype=jnp.float32)
    src = jax.random.randint(k_src, (B, S), 0, V, dtype=jnp.int32)
    pos_enc = positional_encoding(S, D)

    out = text_input_forward(src, embed_table, pos_enc)
    out = jax.block_until_ready(out)

    # pure-JAX reference: embed(src).permute(1,0,2) + pos_enc.permute(1,0,2)
    ref = jnp.transpose(embed_table[src], (1, 0, 2)) + pos_enc[:, None, :]
    assert out.shape == (S, B, D), out.shape
    np.testing.assert_allclose(np.asarray(out), np.asarray(ref), rtol=1e-6, atol=1e-6)

    print("KERNEL_OK")
</pallas_src>

<mosaic_0001>
module attributes {stable_mosaic.version = 11 : i64} {
  func.func @_embed_add_kernel(%arg0: i32, %arg1: memref<16xi32, #tpu.memory_space<smem>>, %arg2: memref<50x256xf32, #tpu.memory_space<vmem>>, %arg3: memref<8x256xf32, #tpu.memory_space<vmem>>, %arg4: memref<16x256xf32, #tpu.memory_space<vmem>>) attributes {dimension_semantics = [#tpu.dimension_semantics<parallel>], iteration_bounds = array<i64: 1>, scalar_prefetch = 1 : i64, scratch_operands = 0 : i64, tpu.core_type = #tpu.core_type<tc>, window_params = [{pipeline_mode = #tpu.pipeline_mode<synchronous>, transform_indices = @transform_0, window_bounds = array<i64: 50, 256>}, {transform_indices = @transform_1, window_bounds = array<i64: 8, 256>}, {transform_indices = @transform_2, window_bounds = array<i64: 16, 256>}]} {
    %c16_i32 = arith.constant 16 : i32
    %0 = arith.muli %arg0, %c16_i32 : i32
    %c0_i32 = arith.constant 0 : i32
    %1 = arith.addi %0, %c0_i32 : i32
    %2 = arith.index_cast %1 : i32 to index
    %3 = memref.load %arg1[%2] : memref<16xi32, #tpu.memory_space<smem>>
    %c0_i32_0 = arith.constant 0 : i32
    %c49_i32 = arith.constant 49 : i32
    %4 = arith.maxsi %c0_i32_0, %3 : i32
    %5 = arith.minsi %c49_i32, %4 : i32
    %6 = arith.index_cast %5 : i32 to index
    %c0 = arith.constant 0 : index
    %7 = vector.load %arg2[%6, %c0] : memref<50x256xf32, #tpu.memory_space<vmem>>, vector<1x256xf32>
    %c0_1 = arith.constant 0 : index
    %c0_2 = arith.constant 0 : index
    %8 = vector.load %arg3[%c0_1, %c0_2] : memref<8x256xf32, #tpu.memory_space<vmem>>, vector<1x256xf32>
    %9 = arith.addf %7, %8 : vector<1x256xf32>
    %c0_3 = arith.constant 0 : index
    %c0_4 = arith.constant 0 : index
    %10 = vector.load %arg4[%c0_3, %c0_4] : memref<16x256xf32, #tpu.memory_space<vmem>>, vector<1x256xf32>
    tpu.vector_store %arg4[%c0_3, %c0_4], %9 {strides = array<i32>} : memref<16x256xf32, #tpu.memory_space<vmem>>, vector<1x256xf32>,
    %c1_i32 = arith.constant 1 : i32
    %11 = arith.addi %0, %c1_i32 : i32
    %12 = arith.index_cast %11 : i32 to index
    %13 = memref.load %arg1[%12] : memref<16xi32, #tpu.memory_space<smem>>
    %c0_i32_5 = arith.constant 0 : i32
    %c49_i32_6 = arith.constant 49 : i32
    %14 = arith.maxsi %c0_i32_5, %13 : i32
    %15 = arith.minsi %c49_i32_6, %14 : i32
    %16 = arith.index_cast %15 : i32 to index
    %c0_7 = arith.constant 0 : index
    %17 = vector.load %arg2[%16, %c0_7] : memref<50x256xf32, #tpu.memory_space<vmem>>, vector<1x256xf32>
    %c0_8 = arith.constant 0 : index
    %c0_9 = arith.constant 0 : index
    %18 = vector.load %arg3[%c0_8, %c0_9] : memref<8x256xf32, #tpu.memory_space<vmem>>, vector<1x256xf32>
    %19 = arith.addf %17, %18 : vector<1x256xf32>
    %c1 = arith.constant 1 : index
    %c0_10 = arith.constant 0 : index
    %20 = vector.load %arg4[%c1, %c0_10] : memref<16x256xf32, #tpu.memory_space<vmem>>, vector<1x256xf32>
    tpu.vector_store %arg4[%c1, %c0_10], %19 {strides = array<i32>} : memref<16x256xf32, #tpu.memory_space<vmem>>, vector<1x256xf32>,
    %c2_i32 = arith.constant 2 : i32
    %21 = arith.addi %0, %c2_i32 : i32
    %22 = arith.index_cast %21 : i32 to index
    %23 = memref.load %arg1[%22] : memref<16xi32, #tpu.memory_space<smem>>
    %c0_i32_11 = arith.constant 0 : i32
    %c49_i32_12 = arith.constant 49 : i32
    %24 = arith.maxsi %c0_i32_11, %23 : i32
    %25 = arith.minsi %c49_i32_12, %24 : i32
    %26 = arith.index_cast %25 : i32 to index
    %c0_13 = arith.constant 0 : index
    %27 = vector.load %arg2[%26, %c0_13] : memref<50x256xf32, #tpu.memory_space<vmem>>, vector<1x256xf32>
    %c1_14 = arith.constant 1 : index
    %c0_15 = arith.constant 0 : index
    %28 = vector.load %arg3[%c1_14, %c0_15] : memref<8x256xf32, #tpu.memory_space<vmem>>, vector<1x256xf32>
    %29 = arith.addf %27, %28 : vector<1x256xf32>
    %c2 = arith.constant 2 : index
    %c0_16 = arith.constant 0 : index
    %30 = vector.load %arg4[%c2, %c0_16] : memref<16x256xf32, #tpu.memory_space<vmem>>, vector<1x256xf32>
    tpu.vector_store %arg4[%c2, %c0_16], %29 {strides = array<i32>} : memref<16x256xf32, #tpu.memory_space<vmem>>, vector<1x256xf32>,
    %c3_i32 = arith.constant 3 : i32
    %31 = arith.addi %0, %c3_i32 : i32
    %32 = arith.index_cast %31 : i32 to index
    %33 = memref.load %arg1[%32] : memref<16xi32, #tpu.memory_space<smem>>
    %c0_i32_17 = arith.constant 0 : i32
    %c49_i32_18 = arith.constant 49 : i32
    %34 = arith.maxsi %c0_i32_17, %33 : i32
    %35 = arith.minsi %c49_i32_18, %34 : i32
    %36 = arith.index_cast %35 : i32 to index
    %c0_19 = arith.constant 0 : index
    %37 = vector.load %arg2[%36, %c0_19] : memref<50x256xf32, #tpu.memory_space<vmem>>, vector<1x256xf32>
    %c1_20 = arith.constant 1 : index
    %c0_21 = arith.constant 0 : index
    %38 = vector.load %arg3[%c1_20, %c0_21] : memref<8x256xf32, #tpu.memory_space<vmem>>, vector<1x256xf32>
    %39 = arith.addf %37, %38 : vector<1x256xf32>
    %c3 = arith.constant 3 : index
    %c0_22 = arith.constant 0 : index
    %40 = vector.load %arg4[%c3, %c0_22] : memref<16x256xf32, #tpu.memory_space<vmem>>, vector<1x256xf32>
    tpu.vector_store %arg4[%c3, %c0_22], %39 {strides = array<i32>} : memref<16x256xf32, #tpu.memory_space<vmem>>, vector<1x256xf32>,
    %c4_i32 = arith.constant 4 : i32
    %41 = arith.addi %0, %c4_i32 : i32
    %42 = arith.index_cast %41 : i32 to index
    %43 = memref.load %arg1[%42] : memref<16xi32, #tpu.memory_space<smem>>
    %c0_i32_23 = arith.constant 0 : i32
    %c49_i32_24 = arith.constant 49 : i32
    %44 = arith.maxsi %c0_i32_23, %43 : i32
    %45 = arith.minsi %c49_i32_24, %44 : i32
    %46 = arith.index_cast %45 : i32 to index
    %c0_25 = arith.constant 0 : index
    %47 = vector.load %arg2[%46, %c0_25] : memref<50x256xf32, #tpu.memory_space<vmem>>, vector<1x256xf32>
    %c2_26 = arith.constant 2 : index
    %c0_27 = arith.constant 0 : index
    %48 = vector.load %arg3[%c2_26, %c0_27] : memref<8x256xf32, #tpu.memory_space<vmem>>, vector<1x256xf32>
    %49 = arith.addf %47, %48 : vector<1x256xf32>
    %c4 = arith.constant 4 : index
    %c0_28 = arith.constant 0 : index
    %50 = vector.load %arg4[%c4, %c0_28] : memref<16x256xf32, #tpu.memory_space<vmem>>, vector<1x256xf32>
    tpu.vector_store %arg4[%c4, %c0_28], %49 {strides = array<i32>} : memref<16x256xf32, #tpu.memory_space<vmem>>, vector<1x256xf32>,
    %c5_i32 = arith.constant 5 : i32
    %51 = arith.addi %0, %c5_i32 : i32
    %52 = arith.index_cast %51 : i32 to index
    %53 = memref.load %arg1[%52] : memref<16xi32, #tpu.memory_space<smem>>
    %c0_i32_29 = arith.constant 0 : i32
    %c49_i32_30 = arith.constant 49 : i32
    %54 = arith.maxsi %c0_i32_29, %53 : i32
    %55 = arith.minsi %c49_i32_30, %54 : i32
    %56 = arith.index_cast %55 : i32 to index
    %c0_31 = arith.constant 0 : index
    %57 = vector.load %arg2[%56, %c0_31] : memref<50x256xf32, #tpu.memory_space<vmem>>, vector<1x256xf32>
    %c2_32 = arith.constant 2 : index
    %c0_33 = arith.constant 0 : index
    %58 = vector.load %arg3[%c2_32, %c0_33] : memref<8x256xf32, #tpu.memory_space<vmem>>, vector<1x256xf32>
    %59 = arith.addf %57, %58 : vector<1x256xf32>
    %c5 = arith.constant 5 : index
    %c0_34 = arith.constant 0 : index
    %60 = vector.load %arg4[%c5, %c0_34] : memref<16x256xf32, #tpu.memory_space<vmem>>, vector<1x256xf32>
    tpu.vector_store %arg4[%c5, %c0_34], %59 {strides = array<i32>} : memref<16x256xf32, #tpu.memory_space<vmem>>, vector<1x256xf32>,
    %c6_i32 = arith.constant 6 : i32
    %61 = arith.addi %0, %c6_i32 : i32
    %62 = arith.index_cast %61 : i32 to index
    %63 = memref.load %arg1[%62] : memref<16xi32, #tpu.memory_space<smem>>
    %c0_i32_35 = arith.constant 0 : i32
    %c49_i32_36 = arith.constant 49 : i32
    %64 = arith.maxsi %c0_i32_35, %63 : i32
    %65 = arith.minsi %c49_i32_36, %64 : i32
    %66 = arith.index_cast %65 : i32 to index
    %c0_37 = arith.constant 0 : index
    %67 = vector.load %arg2[%66, %c0_37] : memref<50x256xf32, #tpu.memory_space<vmem>>, vector<1x256xf32>
    %c3_38 = arith.constant 3 : index
    %c0_39 = arith.constant 0 : index
    %68 = vector.load %arg3[%c3_38, %c0_39] : memref<8x256xf32, #tpu.memory_space<vmem>>, vector<1x256xf32>
    %69 = arith.addf %67, %68 : vector<1x256xf32>
    %c6 = arith.constant 6 : index
    %c0_40 = arith.constant 0 : index
    %70 = vector.load %arg4[%c6, %c0_40] : memref<16x256xf32, #tpu.memory_space<vmem>>, vector<1x256xf32>
    tpu.vector_store %arg4[%c6, %c0_40], %69 {strides = array<i32>} : memref<16x256xf32, #tpu.memory_space<vmem>>, vector<1x256xf32>,
    %c7_i32 = arith.constant 7 : i32
    %71 = arith.addi %0, %c7_i32 : i32
    %72 = arith.index_cast %71 : i32 to index
    %73 = memref.load %arg1[%72] : memref<16xi32, #tpu.memory_space<smem>>
    %c0_i32_41 = arith.constant 0 : i32
    %c49_i32_42 = arith.constant 49 : i32
    %74 = arith.maxsi %c0_i32_41, %73 : i32
    %75 = arith.minsi %c49_i32_42, %74 : i32
    %76 = arith.index_cast %75 : i32 to index
    %c0_43 = arith.constant 0 : index
    %77 = vector.load %arg2[%76, %c0_43] : memref<50x256xf32, #tpu.memory_space<vmem>>, vector<1x256xf32>
    %c3_44 = arith.constant 3 : index
    %c0_45 = arith.constant 0 : index
    %78 = vector.load %arg3[%c3_44, %c0_45] : memref<8x256xf32, #tpu.memory_space<vmem>>, vector<1x256xf32>
    %79 = arith.addf %77, %78 : vector<1x256xf32>
    %c7 = arith.constant 7 : index
    %c0_46 = arith.constant 0 : index
    %80 = vector.load %arg4[%c7, %c0_46] : memref<16x256xf32, #tpu.memory_space<vmem>>, vector<1x256xf32>
    tpu.vector_store %arg4[%c7, %c0_46], %79 {strides = array<i32>} : memref<16x256xf32, #tpu.memory_space<vmem>>, vector<1x256xf32>,
    %c8_i32 = arith.constant 8 : i32
    %81 = arith.addi %0, %c8_i32 : i32
    %82 = arith.index_cast %81 : i32 to index
    %83 = memref.load %arg1[%82] : memref<16xi32, #tpu.memory_space<smem>>
    %c0_i32_47 = arith.constant 0 : i32
    %c49_i32_48 = arith.constant 49 : i32
    %84 = arith.maxsi %c0_i32_47, %83 : i32
    %85 = arith.minsi %c49_i32_48, %84 : i32
    %86 = arith.index_cast %85 : i32 to index
    %c0_49 = arith.constant 0 : index
    %87 = vector.load %arg2[%86, %c0_49] : memref<50x256xf32, #tpu.memory_space<vmem>>, vector<1x256xf32>
    %c4_50 = arith.constant 4 : index
    %c0_51 = arith.constant 0 : index
    %88 = vector.load %arg3[%c4_50, %c0_51] : memref<8x256xf32, #tpu.memory_space<vmem>>, vector<1x256xf32>
    %89 = arith.addf %87, %88 : vector<1x256xf32>
    %c8 = arith.constant 8 : index
    %c0_52 = arith.constant 0 : index
    %90 = vector.load %arg4[%c8, %c0_52] : memref<16x256xf32, #tpu.memory_space<vmem>>, vector<1x256xf32>
    tpu.vector_store %arg4[%c8, %c0_52], %89 {strides = array<i32>} : memref<16x256xf32, #tpu.memory_space<vmem>>, vector<1x256xf32>,
    %c9_i32 = arith.constant 9 : i32
    %91 = arith.addi %0, %c9_i32 : i32
    %92 = arith.index_cast %91 : i32 to index
    %93 = memref.load %arg1[%92] : memref<16xi32, #tpu.memory_space<smem>>
    %c0_i32_53 = arith.constant 0 : i32
    %c49_i32_54 = arith.constant 49 : i32
    %94 = arith.maxsi %c0_i32_53, %93 : i32
    %95 = arith.minsi %c49_i32_54, %94 : i32
    %96 = arith.index_cast %95 : i32 to index
    %c0_55 = arith.constant 0 : index
    %97 = vector.load %arg2[%96, %c0_55] : memref<50x256xf32, #tpu.memory_space<vmem>>, vector<1x256xf32>
    %c4_56 = arith.constant 4 : index
    %c0_57 = arith.constant 0 : index
    %98 = vector.load %arg3[%c4_56, %c0_57] : memref<8x256xf32, #tpu.memory_space<vmem>>, vector<1x256xf32>
    %99 = arith.addf %97, %98 : vector<1x256xf32>
    %c9 = arith.constant 9 : index
    %c0_58 = arith.constant 0 : index
    %100 = vector.load %arg4[%c9, %c0_58] : memref<16x256xf32, #tpu.memory_space<vmem>>, vector<1x256xf32>
    tpu.vector_store %arg4[%c9, %c0_58], %99 {strides = array<i32>} : memref<16x256xf32, #tpu.memory_space<vmem>>, vector<1x256xf32>,
    %c10_i32 = arith.constant 10 : i32
    %101 = arith.addi %0, %c10_i32 : i32
    %102 = arith.index_cast %101 : i32 to index
    %103 = memref.load %arg1[%102] : memref<16xi32, #tpu.memory_space<smem>>
    %c0_i32_59 = arith.constant 0 : i32
    %c49_i32_60 = arith.constant 49 : i32
    %104 = arith.maxsi %c0_i32_59, %103 : i32
    %105 = arith.minsi %c49_i32_60, %104 : i32
    %106 = arith.index_cast %105 : i32 to index
    %c0_61 = arith.constant 0 : index
    %107 = vector.load %arg2[%106, %c0_61] : memref<50x256xf32, #tpu.memory_space<vmem>>, vector<1x256xf32>
    %c5_62 = arith.constant 5 : index
    %c0_63 = arith.constant 0 : index
    %108 = vector.load %arg3[%c5_62, %c0_63] : memref<8x256xf32, #tpu.memory_space<vmem>>, vector<1x256xf32>
    %109 = arith.addf %107, %108 : vector<1x256xf32>
    %c10 = arith.constant 10 : index
    %c0_64 = arith.constant 0 : index
    %110 = vector.load %arg4[%c10, %c0_64] : memref<16x256xf32, #tpu.memory_space<vmem>>, vector<1x256xf32>
    tpu.vector_store %arg4[%c10, %c0_64], %109 {strides = array<i32>} : memref<16x256xf32, #tpu.memory_space<vmem>>, vector<1x256xf32>,
    %c11_i32 = arith.constant 11 : i32
    %111 = arith.addi %0, %c11_i32 : i32
    %112 = arith.index_cast %111 : i32 to index
    %113 = memref.load %arg1[%112] : memref<16xi32, #tpu.memory_space<smem>>
    %c0_i32_65 = arith.constant 0 : i32
    %c49_i32_66 = arith.constant 49 : i32
    %114 = arith.maxsi %c0_i32_65, %113 : i32
    %115 = arith.minsi %c49_i32_66, %114 : i32
    %116 = arith.index_cast %115 : i32 to index
    %c0_67 = arith.constant 0 : index
    %117 = vector.load %arg2[%116, %c0_67] : memref<50x256xf32, #tpu.memory_space<vmem>>, vector<1x256xf32>
    %c5_68 = arith.constant 5 : index
    %c0_69 = arith.constant 0 : index
    %118 = vector.load %arg3[%c5_68, %c0_69] : memref<8x256xf32, #tpu.memory_space<vmem>>, vector<1x256xf32>
    %119 = arith.addf %117, %118 : vector<1x256xf32>
    %c11 = arith.constant 11 : index
    %c0_70 = arith.constant 0 : index
    %120 = vector.load %arg4[%c11, %c0_70] : memref<16x256xf32, #tpu.memory_space<vmem>>, vector<1x256xf32>
    tpu.vector_store %arg4[%c11, %c0_70], %119 {strides = array<i32>} : memref<16x256xf32, #tpu.memory_space<vmem>>, vector<1x256xf32>,
    %c12_i32 = arith.constant 12 : i32
    %121 = arith.addi %0, %c12_i32 : i32
    %122 = arith.index_cast %121 : i32 to index
    %123 = memref.load %arg1[%122] : memref<16xi32, #tpu.memory_space<smem>>
    %c0_i32_71 = arith.constant 0 : i32
    %c49_i32_72 = arith.constant 49 : i32
    %124 = arith.maxsi %c0_i32_71, %123 : i32
    %125 = arith.minsi %c49_i32_72, %124 : i32
    %126 = arith.index_cast %125 : i32 to index
    %c0_73 = arith.constant 0 : index
    %127 = vector.load %arg2[%126, %c0_73] : memref<50x256xf32, #tpu.memory_space<vmem>>, vector<1x256xf32>
    %c6_74 = arith.constant 6 : index
    %c0_75 = arith.constant 0 : index
    %128 = vector.load %arg3[%c6_74, %c0_75] : memref<8x256xf32, #tpu.memory_space<vmem>>, vector<1x256xf32>
    %129 = arith.addf %127, %128 : vector<1x256xf32>
    %c12 = arith.constant 12 : index
    %c0_76 = arith.constant 0 : index
    %130 = vector.load %arg4[%c12, %c0_76] : memref<16x256xf32, #tpu.memory_space<vmem>>, vector<1x256xf32>
    tpu.vector_store %arg4[%c12, %c0_76], %129 {strides = array<i32>} : memref<16x256xf32, #tpu.memory_space<vmem>>, vector<1x256xf32>,
    %c13_i32 = arith.constant 13 : i32
    %131 = arith.addi %0, %c13_i32 : i32
    %132 = arith.index_cast %131 : i32 to index
    %133 = memref.load %arg1[%132] : memref<16xi32, #tpu.memory_space<smem>>
    %c0_i32_77 = arith.constant 0 : i32
    %c49_i32_78 = arith.constant 49 : i32
    %134 = arith.maxsi %c0_i32_77, %133 : i32
    %135 = arith.minsi %c49_i32_78, %134 : i32
    %136 = arith.index_cast %135 : i32 to index
    %c0_79 = arith.constant 0 : index
    %137 = vector.load %arg2[%136, %c0_79] : memref<50x256xf32, #tpu.memory_space<vmem>>, vector<1x256xf32>
    %c6_80 = arith.constant 6 : index
    %c0_81 = arith.constant 0 : index
    %138 = vector.load %arg3[%c6_80, %c0_81] : memref<8x256xf32, #tpu.memory_space<vmem>>, vector<1x256xf32>
    %139 = arith.addf %137, %138 : vector<1x256xf32>
    %c13 = arith.constant 13 : index
    %c0_82 = arith.constant 0 : index
    %140 = vector.load %arg4[%c13, %c0_82] : memref<16x256xf32, #tpu.memory_space<vmem>>, vector<1x256xf32>
    tpu.vector_store %arg4[%c13, %c0_82], %139 {strides = array<i32>} : memref<16x256xf32, #tpu.memory_space<vmem>>, vector<1x256xf32>,
    %c14_i32 = arith.constant 14 : i32
    %141 = arith.addi %0, %c14_i32 : i32
    %142 = arith.index_cast %141 : i32 to index
    %143 = memref.load %arg1[%142] : memref<16xi32, #tpu.memory_space<smem>>
    %c0_i32_83 = arith.constant 0 : i32
    %c49_i32_84 = arith.constant 49 : i32
    %144 = arith.maxsi %c0_i32_83, %143 : i32
    %145 = arith.minsi %c49_i32_84, %144 : i32
    %146 = arith.index_cast %145 : i32 to index
    %c0_85 = arith.constant 0 : index
    %147 = vector.load %arg2[%146, %c0_85] : memref<50x256xf32, #tpu.memory_space<vmem>>, vector<1x256xf32>
    %c7_86 = arith.constant 7 : index
    %c0_87 = arith.constant 0 : index
    %148 = vector.load %arg3[%c7_86, %c0_87] : memref<8x256xf32, #tpu.memory_space<vmem>>, vector<1x256xf32>
    %149 = arith.addf %147, %148 : vector<1x256xf32>
    %c14 = arith.constant 14 : index
    %c0_88 = arith.constant 0 : index
    %150 = vector.load %arg4[%c14, %c0_88] : memref<16x256xf32, #tpu.memory_space<vmem>>, vector<1x256xf32>
    tpu.vector_store %arg4[%c14, %c0_88], %149 {strides = array<i32>} : memref<16x256xf32, #tpu.memory_space<vmem>>, vector<1x256xf32>,
    %c15_i32 = arith.constant 15 : i32
    %151 = arith.addi %0, %c15_i32 : i32
    %152 = arith.index_cast %151 : i32 to index
    %153 = memref.load %arg1[%152] : memref<16xi32, #tpu.memory_space<smem>>
    %c0_i32_89 = arith.constant 0 : i32
    %c49_i32_90 = arith.constant 49 : i32
    %154 = arith.maxsi %c0_i32_89, %153 : i32
    %155 = arith.minsi %c49_i32_90, %154 : i32
    %156 = arith.index_cast %155 : i32 to index
    %c0_91 = arith.constant 0 : index
    %157 = vector.load %arg2[%156, %c0_91] : memref<50x256xf32, #tpu.memory_space<vmem>>, vector<1x256xf32>
    %c7_92 = arith.constant 7 : index
    %c0_93 = arith.constant 0 : index
    %158 = vector.load %arg3[%c7_92, %c0_93] : memref<8x256xf32, #tpu.memory_space<vmem>>, vector<1x256xf32>
    %159 = arith.addf %157, %158 : vector<1x256xf32>
    %c15 = arith.constant 15 : index
    %c0_94 = arith.constant 0 : index
    %160 = vector.load %arg4[%c15, %c0_94] : memref<16x256xf32, #tpu.memory_space<vmem>>, vector<1x256xf32>
    tpu.vector_store %arg4[%c15, %c0_94], %159 {strides = array<i32>} : memref<16x256xf32, #tpu.memory_space<vmem>>, vector<1x256xf32>,
    return
  }
  func.func @transform_0(%arg0: i32, %arg1: memref<16xi32, #tpu.memory_space<smem>>) -> (i32, i32) {
    %c0_i32 = arith.constant 0 : i32
    %c0_i32_0 = arith.constant 0 : i32
    %c0_i32_1 = arith.constant 0 : i32
    return %c0_i32, %c0_i32_0 : i32, i32
  }
  func.func @transform_1(%arg0: i32, %arg1: memref<16xi32, #tpu.memory_space<smem>>) -> (i32, i32) {
    %c0_i32 = arith.constant 0 : i32
    %c0_i32_0 = arith.constant 0 : i32
    return %arg0, %c0_i32 : i32, i32
  }
  func.func @transform_2(%arg0: i32, %arg1: memref<16xi32, #tpu.memory_space<smem>>) -> (i32, i32) {
    %c0_i32 = arith.constant 0 : i32
    %c0_i32_0 = arith.constant 0 : i32
    return %arg0, %c0_i32 : i32, i32
  }
}

</mosaic_0001>

<bundles_post_ra>
// kernel: tpu_custom_call.1
= control target key start
LH: loop header
LB: loop body
LE: loop exit
PB: predicated region body
PF: predicated region fallthrough
CT: control target
= control target key end

     0   :  { %s722_s15 = smov [#allocation3]   ;;  %s898_s0 = inlined_call_operand.hbm [shape: s32[16], index: 0, kind: input, shape index: {}]   ;;  %s899_s1 = inlined_call_operand.hbm [shape: f32[50,256], index: 1, kind: input, shape index: {}]   ;;  %s900_s2 = inlined_call_operand.hbm [shape: f32[8,256], index: 2, kind: input, shape index: {}]   ;;  %s901_s3 = inlined_call_operand.hbm [shape: f32[16,256], index: 3, kind: output, shape index: {}]  }
   0x1   :  { %s9_s14 = sshll.u32 %s898_s0, 4  ;;  %s10_s14 = int_to_ptr.hbm [resolvable:$true] %s9_s14 }
   0x2   :  { %12 = dma.hbm_to_smem %s10_s14, 16, %s722_s15, [#allocation2] }
   0x3   :  { %714 = dma.done.wait [#allocation2], 16 }
   0x4   :  { %715 = vsyncadd [#allocation2], 4294967280 }
   0x5   :  { %15 = sfence }
   0x6   :  { %16 = vsyncpa [#allocation5], 0 }
   0x7   :  { %17 = vsyncpa [#allocation8], 0 }
   0x8   :  { %18 = vsyncpa [#allocation6], 0  ;;  %s23_s18 = sshll.u32 %s899_s1, 4  ;;  %s723_s19 = smov [#allocation4]   ;;  %s24_s18 = int_to_ptr.hbm [resolvable:$true] %s23_s18 }
   0x9   :  { %s25_s20 = sshll.u32 %s723_s19, 4  ;;  %s37_s0 = sshll.u32 %s900_s2, 4  ;;  %s26_s20 = int_to_ptr.vmem [resolvable:$true] %s25_s20  ;;  %s38_s0 = int_to_ptr.hbm [resolvable:$true] %s37_s0 }
   0xa   :  { %s724_s23 = smov 256   ;;  %s725_s24 = smov 16  }
   0xb   :  { %31 = dma.hbm_to_vmem [thread:$0]  %s24_s18, 1792, %s26_s20, [#allocation5], %s724_s23, %s724_s23, %s725_s24  }
   0xc   :  { %s726_s25 = smov [#allocation7]  }
   0xd   :  { %s39_s26 = sshll.u32 %s726_s25, 4  ;;  %s40_s26 = int_to_ptr.vmem [resolvable:$true] %s39_s26 }
   0xe   :  { %42 = dma.hbm_to_vmem [thread:$0]  %s38_s0, 256, %s40_s26, [#allocation8]  }
   0xf   :  { %716 = dma.done.wait [#allocation5], 1792  }
  0x10   :  { %717 = vsyncadd [#allocation5], 4294965504 }
  0x11   :  { %718 = dma.done.wait [#allocation8], 256  }
  0x12   :  { %719 = vsyncadd [#allocation8], 4294967040  ;;  %s52_s1 = sld [smem:[#allocation3]]  ;;  %v68_v0 = vlaneseq  ;;  %v66_v1 = vld [vmem:[#allocation7] ss:$8 sm:$0x3] }
  0x13   :  { %s456_s27 = sld [smem:[#allocation3 + $0x1]]  ;;  %v89_v2 = vld [vmem:[#allocation7] ss:$8 sm:$0x3] }
  0x14   :  { %s760_s28 = sld [smem:[#allocation3 + $0x2]]  ;;  %vm768_vm0 = vcmp.lt.s32.totalorder %v68_v0, 256  ;;  %v110_v8 = vld [vmem:[#allocation7 + $0x1] ss:$8 sm:$0x3] }
  0x15   :  { %s762_s2 = sld [smem:[#allocation3 + $0x3]]  ;;  %v130_v11 = vld [vmem:[#allocation7 + $0x1] ss:$8 sm:$0x3] }
  0x16   :  { %s764_s29 = sld [smem:[#allocation3 + $0x4]]  ;;  %v151_v14 = vld [vmem:[#allocation7 + $0x2] ss:$8 sm:$0x3] }
  0x17   :  { %s766_s30 = sld [smem:[#allocation3 + $0x5]]  ;;  %v171_v17 = vld [vmem:[#allocation7 + $0x2] ss:$8 sm:$0x3] }
  0x18   :  { %p53_p0 = scmp.gt.s32.totalorder %s52_s1, 0  ;;  %p449_p1 = scmp.lt.s32.totalorder %s52_s1, 49  ;;  %v192_v20 = vld [vmem:[#allocation7 + $0x3] ss:$8 sm:$0x3] }
  0x19   :  { %p76_p2 = scmp.gt.s32.totalorder %s456_s27, 0  ;;  %p457_p3 = scmp.lt.s32.totalorder %s456_s27, 49  ;;  %v212_v23 = vld [vmem:[#allocation7 + $0x3] ss:$8 sm:$0x3] }
  0x1a   :  { %s905_s1 = smov (!%p53_p0, %s52_s1), 0  ;;  %p96_p4 = scmp.gt.s32.totalorder %s760_s28, 0  ;;  %v233_v26 = vld [vmem:[#allocation7 + $0x4] ss:$8 sm:$0x3] }
  0x1b   :  { %s907_s27 = smov (!%p76_p2, %s456_s27), 0  ;;  %s909_s1 = smov (!%p449_p1, %s905_s1), 49  ;;  %v253_v29 = vld [vmem:[#allocation7 + $0x4] ss:$8 sm:$0x3] }
  0x1c   :  { %s911_s27 = smov (!%p457_p3, %s907_s27), 49  ;;  %s57_s4 = sshra.s32 %s909_s1, 3  ;;  %v274_v32 = vld [vmem:[#allocation7 + $0x5] ss:$8 sm:$0x3] }
  0x1d   :  { %s60_s5 = sand.u32 7, %s909_s1  ;;  %s578_s6 = sshll.u32 %s57_s4, 4  ;;  %v294_v35 = vld [vmem:[#allocation7 + $0x5] ss:$8 sm:$0x3] }
  0x1e   :  { %s80_s7 = sshra.s32 %s911_s27, 3  ;;  %s63_s8 = sadd.s32 %s578_s6, %s60_s5  ;;  %v315_v38 = vld [vmem:[#allocation7 + $0x6] ss:$8 sm:$0x3] }
  0x1f   :  { %s83_s9 = sand.u32 7, %s911_s27  ;;  %s581_s10 = sshll.u32 %s80_s7, 4  ;;  %v335_v41 = vld [vmem:[#allocation7 + $0x6] ss:$8 sm:$0x3] }
  0x20   :  { %s64_s11 = scalar_lea.vmem [#allocation4], %s63_s8  ;;  %s86_s12 = sadd.s32 %s581_s10, %s83_s9  ;;  %v356_v44 = vld [vmem:[#allocation7 + $0x7] ss:$8 sm:$0x3] }
  0x21   :  { %v65_v3 = vld [vmem:[%s64_s11] ss:$8 sm:$0x3]  ;;  %p465_p5 = scmp.lt.s32.totalorder %s760_s28, 49  ;;  %s87_s13 = scalar_lea.vmem [#allocation4], %s86_s12 }
  0x22   :  { %v67_v5 = vadd.f32 %v66_v1, %v65_v3  ;;  %v88_v6 = vld [vmem:[%s87_s13] ss:$8 sm:$0x3]  ;;  %s913_s28 = smov (!%p96_p4, %s760_s28), 0  ;;  %p117_p6 = scmp.gt.s32.totalorder %s762_s2, 0 }
  0x23   :  { %v90_v7 = vadd.f32 %v89_v2, %v88_v6  ;;  %p473_p7 = scmp.lt.s32.totalorder %s762_s2, 49  ;;  %s915_s28 = smov (!%p465_p5, %s913_s28), 49  ;;  %v376_v47 = vld [vmem:[#allocation7 + $0x7] ss:$8 sm:$0x3] }
  0x24   :  { %72 = vst.msk [vmem:[#allocation9] ss:$8 sm:$0x3] %vm768_vm0, %v67_v5  ;;  %s118_s14 = scalar_select %p117_p6, %s762_s2, 0 }
  0x25   :  { %92 = vst.msk [vmem:[#allocation9 + $0x1] ss:$8 sm:$0x3] %vm768_vm0, %v90_v7  ;;  %s100_s15 = sshra.s32 %s915_s28, 3  ;;  %s103_s16 = sand.u32 7, %s915_s28 }
  0x26   :  { %s584_s17 = sshll.u32 %s100_s15, 4  ;;  %p137_p8 = scmp.gt.s32.totalorder %s764_s29, 0 }
  0x27   :  { %s106_s18 = sadd.s32 %s584_s17, %s103_s16  ;;  %p481_p9 = scmp.lt.s32.totalorder %s764_s29, 49 }
  0x28   :  { %p158_p10 = scmp.gt.s32.totalorder %s766_s30, 0  ;;  %s107_s19 = scalar_lea.vmem [#allocation4], %s106_s18 }
  0x29   :  { %v108_v9 = vld [vmem:[%s107_s19] ss:$8 sm:$0x3]  ;;  %s917_s14 = smov (!%p473_p7, %s118_s14), 49  ;;  %p489_p11 = scmp.lt.s32.totalorder %s766_s30, 49 }
  0x2a   :  { %v111_v10 = vadd.f32 %v110_v8, %v108_v9  ;;  %s138_s20 = scalar_select %p137_p8, %s764_s29, 0 }
  0x2b   :  { %s121_s21 = sshra.s32 %s917_s14, 3  ;;  %s124_s22 = sand.u32 7, %s917_s14 }
  0x2c   :  { %113 = vst.msk [vmem:[#allocation9 + $0x2] ss:$8 sm:$0x3] %vm768_vm0, %v111_v10  ;;  %s587_s0 = sshll.u32 %s121_s21, 4  ;;  %s791_s26 = sld [smem:[#allocation3 + $0x6]] }
  0x2d   :  { %s127_s25 = sadd.s32 %s587_s0, %s124_s22  ;;  %s793_s1 = sld [smem:[#allocation3 + $0x7]] }
  0x2e   :  { %s128_s27 = scalar_lea.vmem [#allocation4], %s127_s25  ;;  %s919_s20 = smov (!%p481_p9, %s138_s20), 49 }
  0x2f   :  { %v129_v12 = vld [vmem:[%s128_s27] ss:$8 sm:$0x3]  ;;  %s159_s28 = scalar_select %p158_p10, %s766_s30, 0 }
  0x30   :  { %v131_v13 = vadd.f32 %v130_v11, %v129_v12  ;;  %s141_s2 = sshra.s32 %s919_s20, 3  ;;  %s144_s4 = sand.u32 7, %s919_s20 }
  0x31   :  { %s590_s5 = sshll.u32 %s141_s2, 4  ;;  %s802_s6 = sld [smem:[#allocation3 + $0x8]] }
  0x32   :  { %133 = vst.msk [vmem:[#allocation9 + $0x3] ss:$8 sm:$0x3] %vm768_vm0, %v131_v13  ;;  %s147_s7 = sadd.s32 %s590_s5, %s144_s4  ;;  %p178_p12 = scmp.gt.s32.totalorder %s791_s26, 0 }
  0x33   :  { %p497_p13 = scmp.lt.s32.totalorder %s791_s26, 49  ;;  %s148_s29 = scalar_lea.vmem [#allocation4], %s147_s7 }
  0x34   :  { %v149_v15 = vld [vmem:[%s148_s29] ss:$8 sm:$0x3]  ;;  %s921_s28 = smov (!%p489_p11, %s159_s28), 49  ;;  %p199_p0 = scmp.gt.s32.totalorder %s793_s1, 0 }
  0x35   :  { %v152_v16 = vadd.f32 %v151_v14, %v149_v15  ;;  %s179_s8 = scalar_select %p178_p12, %s791_s26, 0 }
  0x36   :  { %s162_s9 = sshra.s32 %s921_s28, 3  ;;  %s165_s10 = sand.u32 7, %s921_s28 }
  0x37   :  { %154 = vst.msk [vmem:[#allocation9 + $0x4] ss:$8 sm:$0x3] %vm768_vm0, %v152_v16  ;;  %s593_s11 = sshll.u32 %s162_s9, 4  ;;  %p505_p1 = scmp.lt.s32.totalorder %s793_s1, 49 }
  0x38   :  { %s168_s12 = sadd.s32 %s593_s11, %s165_s10  ;;  %p219_p2 = scmp.gt.s32.totalorder %s802_s6, 0 }
  0x39   :  { %s169_s13 = scalar_lea.vmem [#allocation4], %s168_s12  ;;  %s923_s8 = smov (!%p497_p13, %s179_s8), 49 }
  0x3a   :  { %v170_v18 = vld [vmem:[%s169_s13] ss:$8 sm:$0x3]  ;;  %s200_s30 = scalar_select %p199_p0, %s793_s1, 0 }
  0x3b   :  { %v172_v19 = vadd.f32 %v171_v17, %v170_v18  ;;  %s182_s14 = sshra.s32 %s923_s8, 3  ;;  %s185_s15 = sand.u32 7, %s923_s8 }
  0x3c   :  { %s596_s16 = sshll.u32 %s182_s14, 4  ;;  %p513_p3 = scmp.lt.s32.totalorder %s802_s6, 49 }
  0x3d   :  { %174 = vst.msk [vmem:[#allocation9 + $0x5] ss:$8 sm:$0x3] %vm768_vm0, %v172_v19  ;;  %s188_s17 = sadd.s32 %s596_s16, %s185_s15  ;;  %s820_s18 = sld [smem:[#allocation3 + $0x9]] }
  0x3e   :  { %s822_s19 = sld [smem:[#allocation3 + $0xa]]  ;;  %s189_s20 = scalar_lea.vmem [#allocation4], %s188_s17 }
  0x3f   :  { %v190_v21 = vld [vmem:[%s189_s20] ss:$8 sm:$0x3]  ;;  %s925_s30 = smov (!%p505_p1, %s200_s30), 49  ;;  %s831_s26 = sld [smem:[#allocation3 + $0xb]] }
  0x40   :  { %v193_v22 = vadd.f32 %v192_v20, %v190_v21  ;;  %s220_s21 = scalar_select %p219_p2, %s802_s6, 0 }
  0x41   :  { %s203_s22 = sshra.s32 %s925_s30, 3  ;;  %s206_s0 = sand.u32 7, %s925_s30 }
  0x42   :  { %195 = vst.msk [vmem:[#allocation9 + $0x6] ss:$8 sm:$0x3] %vm768_vm0, %v193_v22  ;;  %s599_s25 = sshll.u32 %s203_s22, 4  ;;  %s927_s21 = smov (!%p513_p3, %s220_s21), 49 }
  0x43   :  { %s209_s27 = sadd.s32 %s599_s25, %s206_s0  ;;  %p240_p4 = scmp.gt.s32.totalorder %s820_s18, 0 }
  0x44   :  { %p521_p5 = scmp.lt.s32.totalorder %s820_s18, 49  ;;  %s210_s1 = scalar_lea.vmem [#allocation4], %s209_s27 }
  0x45   :  { %v211_v24 = vld [vmem:[%s210_s1] ss:$8 sm:$0x3]  ;;  %s241_s28 = scalar_select %p240_p4, %s820_s18, 0 }
  0x46   :  { %v213_v25 = vadd.f32 %v212_v23, %v211_v24  ;;  %s223_s2 = sshra.s32 %s927_s21, 3  ;;  %s226_s4 = sand.u32 7, %s927_s21 }
  0x47   :  { %s602_s5 = sshll.u32 %s223_s2, 4  ;;  %p260_p6 = scmp.gt.s32.totalorder %s822_s19, 0 }
  0x48   :  { %215 = vst.msk [vmem:[#allocation9 + $0x7] ss:$8 sm:$0x3] %vm768_vm0, %v213_v25  ;;  %s229_s7 = sadd.s32 %s602_s5, %s226_s4  ;;  %p529_p7 = scmp.lt.s32.totalorder %s822_s19, 49 }
  0x49   :  { %p281_p8 = scmp.gt.s32.totalorder %s831_s26, 0  ;;  %s230_s29 = scalar_lea.vmem [#allocation4], %s229_s7 }
  0x4a   :  { %v231_v27 = vld [vmem:[%s230_s29] ss:$8 sm:$0x3]  ;;  %s929_s28 = smov (!%p521_p5, %s241_s28), 49  ;;  %p537_p9 = scmp.lt.s32.totalorder %s831_s26, 49 }
  0x4b   :  { %v234_v28 = vadd.f32 %v233_v26, %v231_v27  ;;  %s261_s6 = scalar_select %p260_p6, %s822_s19, 0 }
  0x4c   :  { %s244_s8 = sshra.s32 %s929_s28, 3  ;;  %s247_s9 = sand.u32 7, %s929_s28 }
  0x4d   :  { %236 = vst.msk [vmem:[#allocation9 + $0x10] ss:$8 sm:$0x3] %vm768_vm0, %v234_v28  ;;  %s605_s10 = sshll.u32 %s244_s8, 4  ;;  %s849_s12 = sld [smem:[#allocation3 + $0xc]] }
  0x4e   :  { %s250_s11 = sadd.s32 %s605_s10, %s247_s9  ;;  %s851_s13 = sld [smem:[#allocation3 + $0xd]] }
  0x4f   :  { %s251_s30 = scalar_lea.vmem [#allocation4], %s250_s11  ;;  %s931_s6 = smov (!%p529_p7, %s261_s6), 49 }
  0x50   :  { %v252_v30 = vld [vmem:[%s251_s30] ss:$8 sm:$0x3]  ;;  %s282_s14 = scalar_select %p281_p8, %s831_s26, 0 }
  0x51   :  { %v254_v31 = vadd.f32 %v253_v29, %v252_v30  ;;  %s264_s15 = sshra.s32 %s931_s6, 3  ;;  %s267_s16 = sand.u32 7, %s931_s6 }
  0x52   :  { %s608_s17 = sshll.u32 %s264_s15, 4  ;;  %s860_s18 = sld [smem:[#allocation3 + $0xe]] }
  0x53   :  { %256 = vst.msk [vmem:[#allocation9 + $0x11] ss:$8 sm:$0x3] %vm768_vm0, %v254_v31  ;;  %s270_s20 = sadd.s32 %s608_s17, %s267_s16  ;;  %p301_p10 = scmp.gt.s32.totalorder %s849_s12, 0 }
  0x54   :  { %p545_p11 = scmp.lt.s32.totalorder %s849_s12, 49  ;;  %s271_s19 = scalar_lea.vmem [#allocation4], %s270_s20 }
  0x55   :  { %v272_v33 = vld [vmem:[%s271_s19] ss:$8 sm:$0x3]  ;;  %s933_s14 = smov (!%p537_p9, %s282_s14), 49  ;;  %p322_p12 = scmp.gt.s32.totalorder %s851_s13, 0 }
  0x56   :  { %v275_v34 = vadd.f32 %v274_v32, %v272_v33  ;;  %s302_s21 = scalar_select %p301_p10, %s849_s12, 0 }
  0x57   :  { %s285_s22 = sshra.s32 %s933_s14, 3  ;;  %s288_s0 = sand.u32 7, %s933_s14 }
  0x58   :  { %277 = vst.msk [vmem:[#allocation9 + $0x12] ss:$8 sm:$0x3] %vm768_vm0, %v275_v34  ;;  %s611_s25 = sshll.u32 %s285_s22, 4  ;;  %p553_p13 = scmp.lt.s32.totalorder %s851_s13, 49 }
  0x59   :  { %s291_s27 = sadd.s32 %s611_s25, %s288_s0  ;;  %s935_s21 = smov (!%p545_p11, %s302_s21), 49 }
  0x5a   :  { %s292_s1 = scalar_lea.vmem [#allocation4], %s291_s27  ;;  %s305_s28 = sshra.s32 %s935_s21, 3 }
  0x5b   :  { %v293_v36 = vld [vmem:[%s292_s1] ss:$8 sm:$0x3]  ;;  %s323_s26 = scalar_select %p322_p12, %s851_s13, 0 }
  0x5c   :  { %v295_v37 = vadd.f32 %v294_v35, %v293_v36  ;;  %s308_s2 = sand.u32 7, %s935_s21  ;;  %s614_s4 = sshll.u32 %s305_s28, 4 }
  0x5d   :  { %p342_p0 = scmp.gt.s32.totalorder %s860_s18, 0  ;;  %s311_s5 = sadd.s32 %s614_s4, %s308_s2 }
  0x5e   :  { %297 = vst.msk [vmem:[#allocation9 + $0x13] ss:$8 sm:$0x3] %vm768_vm0, %v295_v37  ;;  %s568_s7 = sld [smem:[#allocation3 + $0xf]]  ;;  %p561_p1 = scmp.lt.s32.totalorder %s860_s18, 49 }
  0x5f   :  { %s312_s29 = scalar_lea.vmem [#allocation4], %s311_s5  ;;  %s937_s26 = smov (!%p553_p13, %s323_s26), 49 }
  0x60   :  { %v313_v39 = vld [vmem:[%s312_s29] ss:$8 sm:$0x3]  ;;  %s343_s6 = scalar_select %p342_p0, %s860_s18, 0 }
  0x61   :  { %v316_v40 = vadd.f32 %v315_v38, %v313_v39  ;;  %s326_s8 = sshra.s32 %s937_s26, 3  ;;  %s329_s9 = sand.u32 7, %s937_s26 }
  0x62   :  { %s617_s10 = sshll.u32 %s326_s8, 4  ;;  %s939_s6 = smov (!%p561_p1, %s343_s6), 49 }
  0x63   :  { %318 = vst.msk [vmem:[#allocation9 + $0x14] ss:$8 sm:$0x3] %vm768_vm0, %v316_v40  ;;  %s332_s11 = sadd.s32 %s617_s10, %s329_s9  ;;  %s346_s13 = sshra.s32 %s939_s6, 3 }
  0x64   :  { %p363_p2 = scmp.gt.s32.totalorder %s568_s7, 0  ;;  %p569_p3 = scmp.lt.s32.totalorder %s568_s7, 49 }
  0x65   :  { %s333_s12 = scalar_lea.vmem [#allocation4], %s332_s11  ;;  %s349_s14 = sand.u32 7, %s939_s6 }
  0x66   :  { %v334_v42 = vld [vmem:[%s333_s12] ss:$8 sm:$0x3]  ;;  %s364_s30 = scalar_select %p363_p2, %s568_s7, 0 }
  0x67   :  { %v336_v43 = vadd.f32 %v335_v41, %v334_v42  ;;  %s620_s15 = sshll.u32 %s346_s13, 4  ;;  %s387_s0 = sshll.u32 %s901_s3, 4  ;;  %s388_s0 = int_to_ptr.hbm [resolvable:$true] %s387_s0 }
  0x68   :  { %s352_s16 = sadd.s32 %s620_s15, %s349_s14  ;;  %s941_s30 = smov (!%p569_p3, %s364_s30), 49 }
  0x69   :  { %338 = vst.msk [vmem:[#allocation9 + $0x15] ss:$8 sm:$0x3] %vm768_vm0, %v336_v43  ;;  %s353_s17 = scalar_lea.vmem [#allocation4], %s352_s16  ;;  %s367_s20 = sshra.s32 %s941_s30, 3 }
  0x6a   :  { %v354_v45 = vld [vmem:[%s353_s17] ss:$8 sm:$0x3]  ;;  %s370_s19 = sand.u32 7, %s941_s30  ;;  %s623_s18 = sshll.u32 %s367_s20, 4 }
  0x6b   :  { %v357_v46 = vadd.f32 %v356_v44, %v354_v45  ;;  %s373_s25 = sadd.s32 %s623_s18, %s370_s19  ;;  %s727_s27 = smov [#allocation9]  }
  0x6c   :  { %s385_s1 = sshll.u32 %s727_s27, 4  ;;  %s374_s26 = scalar_lea.vmem [#allocation4], %s373_s25  ;;  %s386_s1 = int_to_ptr.vmem [resolvable:$true] %s385_s1 }
  0x6d   :  { %359 = vst.msk [vmem:[#allocation9 + $0x16] ss:$8 sm:$0x3] %vm768_vm0, %v357_v46  ;;  %v375_v48 = vld [vmem:[%s374_s26] ss:$8 sm:$0x3] }
  0x6e   :  { %v377_v49 = vadd.f32 %v376_v47, %v375_v48 }
  0x70   :  { %379 = vst.msk [vmem:[#allocation9 + $0x17] ss:$8 sm:$0x3] %vm768_vm0, %v377_v49 }
  0x71   :  { %393 = dma.vmem_to_hbm [thread:$0]  %s386_s1, 512, %s388_s0, [#allocation6], %s724_s23, %s724_s23, %s725_s24  }
  0x72   :  { %720 = dma.done.wait [#allocation6], 512  }
  0x73   :  { %721 = vsyncadd [#allocation6], 4294966784 }
  0x74   :  { %398 = vsyncpa [#allocation5], 1 }
  0x75   :  { %399 = vsyncpa [#allocation8], 1 }
  0x76   :  { %400 = vsyncpa [#allocation6], 1 }

</bundles_post_ra>
